<compile_context>
chip_gen: v5e
topology: v5e:2x2
jax: 0.10.0
libtpu: 0.0.40
codegen_flags: <defaults>
</compile_context>

<pallas_src>
import math

import jax
import jax.numpy as jnp
import numpy as np
from jax import lax
from jax.experimental import pallas as pl
from jax.experimental.pallas import tpu as pltpu


def _round_up(v, m):
    return ((v + m - 1) // m) * m


# -----------------------------------------------------------------------------
# Kernel factory: fused ConvGRU over grid (B, ceil(T/Tt)), Tt frames per step.
#   x_ref   : (1, Tt, C, HW)   Tt frames (NCHW with spatial flattened)
#   h0_ref  : (1, C, HW)       initial hidden state for this batch element
#   wih_ref : (2C, 9*2C) bf16  ih conv weights, column = (kh*3+kw)*2C + c_in
#   bih_ref : (2C, 1)   f32
#   whh_ref : (C, 9*2C) bf16   hh conv weights
#   bhh_ref : (C, 1)    f32
#   o_ref   : (1, Tt*C, HW)    new hidden states for this (b, t-block), folded
#   xh_ref  : (2C, L)   f32    padded [x ; h] buffer; rows [C:2C) carry h
# -----------------------------------------------------------------------------
def _make_convgru_kernel(C, H, W, Tt):
    HW = H * W
    C2 = 2 * C
    OFF = _round_up(W + 1, 128)          # left margin, lane aligned
    L = OFF + HW + _round_up(W + 1, 128)  # padded flattened length
    taps = [(kh - 1, kw - 1) for kh in range(3) for kw in range(3)]

    def kernel(x_ref, h0_ref, wih_ref, bih_ref, whh_ref, bhh_ref, o_ref,
               xh_ref):
        tb = pl.program_id(1)

        # t-block == 0: zero the padded buffer once (margins stay zero) and
        # load this batch element's initial hidden state into the h rows.
        @pl.when(tb == 0)
        def _init():
            xh_ref[...] = jnp.zeros((C2, L), jnp.float32)
            xh_ref[C:C2, OFF:OFF + HW] = h0_ref[0].astype(jnp.float32)

        # Hoisted invariants: weights, biases, column-validity masks.
        wih = wih_ref[...]                   # (2C, 9*2C) bf16
        whh = whh_ref[...]                   # (C , 9*2C) bf16
        bih = bih_ref[...]                   # (2C, 1) f32
        bhh = bhh_ref[...]                   # (C , 1) f32
        colj = lax.broadcasted_iota(jnp.int32, (1, HW), 1) % W
        mask_l = colj >= 1                   # valid columns for dx = -1 taps
        mask_r = colj <= (W - 2)             # valid columns for dx = +1 taps

        def gather_cols(xh):
            # xh: (2C, L) f32 value.  Returns the (9*2C, HW) bf16 im2col
            # operand; row f = (kh*3+kw)*2C + c_in.  Row overflow falls into
            # the zero margins; column overflow is killed by the masks.
            pieces = []
            for (dy, dx) in taps:
                s = OFF + dy * W + dx
                v = xh[:, s:s + HW]
                if dx < 0:
                    v = jnp.where(mask_l, v, 0.0)
                elif dx > 0:
                    v = jnp.where(mask_r, v, 0.0)
                pieces.append(v)
            return jnp.concatenate(pieces, axis=0).astype(jnp.bfloat16)

        # Unrolled loop over the Tt frames of this block.  The hidden state is
        # carried in rows [C:2C) of xh_ref, both within the block and across
        # grid steps along the innermost 'arbitrary' T axis.
        for tt in range(Tt):
            x = x_ref[0, tt].astype(jnp.float32)               # (C, HW)
            xh_ref[0:C, OFF:OFF + HW] = x
            xh = xh_ref[...]                                   # (2C, L)
            h = xh[C:C2, OFF:OFF + HW]                         # (C, HW)

            # ih conv: single bf16 MXU pass, f32 accumulate.
            gates = jax.nn.sigmoid(
                jnp.dot(wih, gather_cols(xh),
                        preferred_element_type=jnp.float32) + bih)
            r = gates[0:C, :]
            z = gates[C:C2, :]

            # hh conv on [x | r*h]: overwrite the h rows, re-gather.
            xh_ref[C:C2, OFF:OFF + HW] = r * h
            c = jnp.tanh(
                jnp.dot(whh, gather_cols(xh_ref[...]),
                        preferred_element_type=jnp.float32) + bhh)

            # Gated update (one fewer multiply), carry h, dense output store.
            h_new = h + z * (c - h)
            xh_ref[C:C2, OFF:OFF + HW] = h_new
            o_ref[0, tt * C:(tt + 1) * C, :] = h_new.astype(o_ref.dtype)

    scratch = [pltpu.VMEM((C2, L), jnp.float32)]   # padded [x ; h] + h carry
    return kernel, scratch


# -----------------------------------------------------------------------------
# Wrapper module (PyTorch-compatible forward semantics)
# -----------------------------------------------------------------------------
class ConvGRUPallas:
    def __init__(self, channels: int, key, dtype=jnp.float32):
        C = channels
        self.channels = C
        k1, k2, k3, k4 = jax.random.split(key, 4)
        fan_in = 2 * C * 3 * 3
        bound = 1.0 / math.sqrt(fan_in)        # PyTorch Conv2d default init
        # PyTorch layout: OIHW (kept in f32 for the reference path).
        self.w_ih_oihw = jax.random.uniform(k1, (2 * C, 2 * C, 3, 3), dtype,
                                            -bound, bound)
        self.b_ih_vec = jax.random.uniform(k2, (2 * C,), dtype, -bound, bound)
        self.w_hh_oihw = jax.random.uniform(k3, (C, 2 * C, 3, 3), dtype,
                                            -bound, bound)
        self.b_hh_vec = jax.random.uniform(k4, (C,), dtype, -bound, bound)

        # Kernel layout: (C_out, 9*2C), feature f = (kh*3+kw)*2C + c_in,
        # matching the in-kernel im2col row ordering.  Pre-cast to bf16 so the
        # convs run as single-pass bf16 MXU dots with f32 accumulation.
        self.wih = jnp.transpose(self.w_ih_oihw, (0, 2, 3, 1)) \
                      .reshape(2 * C, 9 * 2 * C).astype(jnp.bfloat16)
        self.whh = jnp.transpose(self.w_hh_oihw, (0, 2, 3, 1)) \
                      .reshape(C, 9 * 2 * C).astype(jnp.bfloat16)
        self.bih = self.b_ih_vec.reshape(2 * C, 1).astype(jnp.float32)
        self.bhh = self.b_hh_vec.reshape(C, 1).astype(jnp.float32)

    # fused (B, T-block) kernel launch on spatial-flattened tensors
    def _run(self, x_flat, h0_flat, H, W):
        B, T, C, HW = x_flat.shape
        C2 = 2 * C

        # Block Tt frames per grid step (amortizes per-step pipeline overhead
        # and turns tiny per-frame DMAs into multi-tile transfers).  Padded
        # frames (x = 0) are computed but discarded in the wrapper.
        Tt = min(T, 8)
        Tn = -(-T // Tt)
        Tpad = Tn * Tt
        if Tpad != T:
            x_flat = jnp.concatenate(
                [x_flat, jnp.zeros((B, Tpad - T, C, HW), x_flat.dtype)],
                axis=1)

        kernel, scratch = _make_convgru_kernel(C, H, W, Tt)

        # The hidden state is carried across the T axis in VMEM scratch, so T
        # MUST stay the innermost ('arbitrary') grid dimension; B is
        # 'parallel' so megacore chips split the batch across TensorCores.
        grid = (B, Tn)
        assert grid[-1] == Tn, "T axis must be the innermost grid dimension"

        o = pl.pallas_call(
            kernel,
            # Output folded to (B, Tpad*C, HW): each grid step writes one
            # lane- AND sublane-dense (Tt*C, HW) slab (C alone is < 8 rows).
            out_shape=jax.ShapeDtypeStruct((B, Tpad * C, HW), x_flat.dtype),
            grid_spec=pltpu.PrefetchScalarGridSpec(
                num_scalar_prefetch=0,
                grid=grid,
                in_specs=[
                    pl.BlockSpec((1, Tt, C, HW), lambda b, t: (b, t, 0, 0)),
                    pl.BlockSpec((1, C, HW), lambda b, t: (b, 0, 0)),
                    pl.BlockSpec((C2, 9 * C2), lambda b, t: (0, 0)),
                    pl.BlockSpec((C2, 1), lambda b, t: (0, 0)),
                    pl.BlockSpec((C, 9 * C2), lambda b, t: (0, 0)),
                    pl.BlockSpec((C, 1), lambda b, t: (0, 0)),
                ],
                out_specs=pl.BlockSpec((1, Tt * C, HW),
                                       lambda b, t: (b, t, 0)),
                scratch_shapes=scratch,
            ),
            compiler_params=pltpu.CompilerParams(
                dimension_semantics=("parallel", "arbitrary")),
        )(x_flat, h0_flat, self.wih, self.bih, self.whh, self.bhh)

        o = o.reshape(B, Tpad, C, HW)[:, :T]
        return o

    # PyTorch-compatible forward: NCHW (single frame) or NTCHW (time series)
    def __call__(self, x, h=None):
        if x.ndim == 5:                        # (B, T, C, H, W)
            B, T, C, H, W = x.shape
            assert C == self.channels
            if h is None:
                h = jnp.zeros((B, C, H, W), x.dtype)
            o = self._run(x.reshape(B, T, C, H * W),
                          h.reshape(B, C, H * W), H, W)
            o = o.reshape(B, T, C, H, W)
            return o, o[:, -1]
        else:                                  # (B, C, H, W)
            B, C, H, W = x.shape
            assert C == self.channels
            if h is None:
                h = jnp.zeros((B, C, H, W), x.dtype)
            o = self._run(x.reshape(B, 1, C, H * W),
                          h.reshape(B, C, H * W), H, W)
            h_new = o.reshape(B, C, H, W)
            return h_new, h_new


# -----------------------------------------------------------------------------
# Pure-JAX references (mirror the PyTorch module semantics, NCHW).
# `emulate_bf16=True` rounds the conv operands to bf16 exactly like the
# kernel's single-pass MXU dots, leaving only accumulation-order /
# transcendental-approx differences vs the kernel.
# -----------------------------------------------------------------------------
def _ref_conv(inp, w_oihw, b):
    y = lax.conv_general_dilated(
        inp, w_oihw, window_strides=(1, 1), padding=((1, 1), (1, 1)),
        dimension_numbers=('NCHW', 'OIHW', 'NCHW'),
        precision=lax.Precision.HIGHEST)
    return y + b[None, :, None, None]


def _bf16(v):
    return v.astype(jnp.bfloat16).astype(jnp.float32)


def ref_single_frame(x, h, m: ConvGRUPallas, emulate_bf16=False):
    C = m.channels
    rnd = _bf16 if emulate_bf16 else (lambda v: v)
    g = jax.nn.sigmoid(_ref_conv(rnd(jnp.concatenate([x, h], axis=1)),
                                 rnd(m.w_ih_oihw), m.b_ih_vec))
    r, z = g[:, :C], g[:, C:]
    c = jnp.tanh(_ref_conv(rnd(jnp.concatenate([x, r * h], axis=1)),
                           rnd(m.w_hh_oihw), m.b_hh_vec))
    h_new = (1.0 - z) * h + z * c
    return h_new, h_new


def ref_time_series(x, h, m: ConvGRUPallas, emulate_bf16=False):
    outs = []
    for t in range(x.shape[1]):
        ot, h = ref_single_frame(x[:, t], h, m, emulate_bf16)
        outs.append(ot)
    return jnp.stack(outs, axis=1), h


# -----------------------------------------------------------------------------
if __name__ == "__main__":
    key = jax.random.PRNGKey(0)
    k_mod, k_x, k_h, k_xs = jax.random.split(key, 4)

    # T = 10 exercises: in-kernel Tt=8 frame block, hidden-state carry across
    # grid steps along the T axis, and T padding to a multiple of Tt.
    B, C, H, W, T = 2, 4, 16, 16, 10
    module = ConvGRUPallas(channels=C, key=k_mod)

    # TIGHT: vs the bf16-operand-rounded reference (structural check; expected
    #        divergence <~1e-3 even after 10 carried steps, structural bugs
    #        show up at O(3e-2 .. 1)).
    # LOOSE: vs the exact f32 reference (bounds the single-pass bf16 MXU
    #        rounding error itself).
    TIGHT = dict(rtol=5e-3, atol=5e-3)
    LOOSE = dict(rtol=5e-2, atol=5e-2)

    def check(out, ref_exact, ref_bf16):
        np.testing.assert_allclose(np.asarray(out), np.asarray(ref_bf16),
                                   **TIGHT)
        np.testing.assert_allclose(np.asarray(out), np.asarray(ref_exact),
                                   **LOOSE)

    # --- single-frame path (x: NCHW, explicit h and h=None) ---
    x = jax.random.normal(k_x, (B, C, H, W), jnp.float32)
    h0 = jax.random.normal(k_h, (B, C, H, W), jnp.float32)

    out_a, _ = module(x, h0)
    jax.block_until_ready(out_a)
    check(out_a,
          ref_single_frame(x, h0, module)[0],
          ref_single_frame(x, h0, module, emulate_bf16=True)[0])

    out_a0, _ = module(x, None)
    jax.block_until_ready(out_a0)
    hz = jnp.zeros_like(x)
    check(out_a0,
          ref_single_frame(x, hz, module)[0],
          ref_single_frame(x, hz, module, emulate_bf16=True)[0])

    # --- time-series path (B, T, C, H, W), T loop fused in-kernel ---
    xs = jax.random.normal(k_xs, (B, T, C, H, W), jnp.float32)
    o_b, h_b = module(xs, h0)
    jax.block_until_ready(o_b)
    jax.block_until_ready(h_b)
    ref_o, ref_h = ref_time_series(xs, h0, module)
    emu_o, emu_h = ref_time_series(xs, h0, module, emulate_bf16=True)
    check(o_b, ref_o, emu_o)
    check(h_b, ref_h, emu_h)

    print("KERNEL_OK")
</pallas_src>

<mosaic_0001>
module attributes {stable_mosaic.version = 11 : i64} {
  func.func @kernel(%arg0: i32, %arg1: i32, %arg2: memref<1x1x4x256xf32, #tpu.memory_space<vmem>>, %arg3: memref<1x4x256xf32, #tpu.memory_space<vmem>>, %arg4: memref<8x72xbf16, #tpu.memory_space<vmem>>, %arg5: memref<8x1xf32, #tpu.memory_space<vmem>>, %arg6: memref<4x72xbf16, #tpu.memory_space<vmem>>, %arg7: memref<4x1xf32, #tpu.memory_space<vmem>>, %arg8: memref<1x4x256xf32, #tpu.memory_space<vmem>>, %arg9: memref<8x512xf32, #tpu.memory_space<vmem>>) attributes {dimension_semantics = [#tpu.dimension_semantics<parallel>, #tpu.dimension_semantics<arbitrary>], iteration_bounds = array<i64: 2, 1>, scalar_prefetch = 0 : i64, scratch_operands = 1 : i64, tpu.core_type = #tpu.core_type<tc>, window_params = [{transform_indices = @transform_0, window_bounds = array<i64: 1, 1, 4, 256>}, {transform_indices = @transform_1, window_bounds = array<i64: 1, 4, 256>}, {pipeline_mode = #tpu.pipeline_mode<synchronous>, transform_indices = @transform_2, window_bounds = array<i64: 8, 72>}, {pipeline_mode = #tpu.pipeline_mode<synchronous>, transform_indices = @transform_3, window_bounds = array<i64: 8, 1>}, {pipeline_mode = #tpu.pipeline_mode<synchronous>, transform_indices = @transform_4, window_bounds = array<i64: 4, 72>}, {pipeline_mode = #tpu.pipeline_mode<synchronous>, transform_indices = @transform_5, window_bounds = array<i64: 4, 1>}, {transform_indices = @transform_6, window_bounds = array<i64: 1, 4, 256>}]} {
    %c0_i32 = arith.constant 0 : i32
    %0 = arith.cmpi eq, %arg1, %c0_i32 : i32
    %1 = arith.extui %0 : i1 to i32
    %c0_i32_0 = arith.constant 0 : i32
    %2 = arith.cmpi ne, %1, %c0_i32_0 : i32
    scf.if %2 {
      %cst_42 = arith.constant 0.000000e+00 : f32
      %127 = vector.broadcast %cst_42 : f32 to vector<8x512xf32>
      %c0_43 = arith.constant 0 : index
      %c0_44 = arith.constant 0 : index
      %128 = vector.load %arg9[%c0_43, %c0_44] : memref<8x512xf32, #tpu.memory_space<vmem>>, vector<8x512xf32>
      tpu.vector_store %arg9[%c0_43, %c0_44], %127 {strides = array<i32>} : memref<8x512xf32, #tpu.memory_space<vmem>>, vector<8x512xf32>,
      %c0_45 = arith.constant 0 : index
      %c0_46 = arith.constant 0 : index
      %c0_47 = arith.constant 0 : index
      %129 = vector.load %arg3[%c0_45, %c0_46, %c0_47] : memref<1x4x256xf32, #tpu.memory_space<vmem>>, vector<1x4x256xf32>
      %130 = vector.shape_cast %129 : vector<1x4x256xf32> to vector<4x256xf32>
      %c4_48 = arith.constant 4 : index
      %c128_49 = arith.constant 128 : index
      %131 = vector.load %arg9[%c4_48, %c128_49] : memref<8x512xf32, #tpu.memory_space<vmem>>, vector<4x256xf32>
      tpu.vector_store %arg9[%c4_48, %c128_49], %130 {strides = array<i32>} : memref<8x512xf32, #tpu.memory_space<vmem>>, vector<4x256xf32>,
    } else {
    }
    %c0 = arith.constant 0 : index
    %c0_1 = arith.constant 0 : index
    %3 = vector.load %arg4[%c0, %c0_1] : memref<8x72xbf16, #tpu.memory_space<vmem>>, vector<8x72xbf16>
    %c0_2 = arith.constant 0 : index
    %c0_3 = arith.constant 0 : index
    %4 = vector.load %arg6[%c0_2, %c0_3] : memref<4x72xbf16, #tpu.memory_space<vmem>>, vector<4x72xbf16>
    %c0_4 = arith.constant 0 : index
    %c0_5 = arith.constant 0 : index
    %5 = vector.load %arg5[%c0_4, %c0_5] : memref<8x1xf32, #tpu.memory_space<vmem>>, vector<8x1xf32>
    %c0_6 = arith.constant 0 : index
    %c0_7 = arith.constant 0 : index
    %6 = vector.load %arg7[%c0_6, %c0_7] : memref<4x1xf32, #tpu.memory_space<vmem>>, vector<4x1xf32>
    %7 = tpu.iota {dimensions = array<i32: 1>} : vector<1x256xi32>
    %c16_i32 = arith.constant 16 : i32
    %c0_i32_8 = arith.constant 0 : i32
    %8 = arith.cmpi eq, %c16_i32, %c0_i32_8 : i32
    %c1_i32 = arith.constant 1 : i32
    %9 = arith.select %8, %c1_i32, %c16_i32 : i32
    %10 = vector.broadcast %9 : i32 to vector<1x256xi32>
    %11 = arith.remsi %7, %10 : vector<1x256xi32>
    %c0_i32_9 = arith.constant 0 : i32
    %12 = vector.broadcast %c0_i32_9 : i32 to vector<1x256xi32>
    %13 = arith.cmpi ne, %11, %12 : vector<1x256xi32>
    %c0_i32_10 = arith.constant 0 : i32
    %14 = vector.broadcast %c0_i32_10 : i32 to vector<1x256xi32>
    %15 = arith.cmpi slt, %11, %14 : vector<1x256xi32>
    %c0_i32_11 = arith.constant 0 : i32
    %16 = arith.cmpi slt, %9, %c0_i32_11 : i32
    %17 = vector.broadcast %16 : i1 to vector<1x256xi1>
    %18 = vector.broadcast %17 : vector<1x256xi1> to vector<1x256xi1>
    %19 = arith.xori %15, %18 : vector<1x256xi1>
    %20 = arith.andi %19, %13 : vector<1x256xi1>
    %21 = vector.broadcast %9 : i32 to vector<1x256xi32>
    %22 = arith.addi %11, %21 : vector<1x256xi32>
    %23 = arith.select %20, %22, %11 : vector<1x256xi1>, vector<1x256xi32>
    %c1_i32_12 = arith.constant 1 : i32
    %24 = vector.broadcast %c1_i32_12 : i32 to vector<1x256xi32>
    %25 = arith.cmpi sge, %23, %24 : vector<1x256xi32>
    %c14_i32 = arith.constant 14 : i32
    %26 = vector.broadcast %c14_i32 : i32 to vector<1x256xi32>
    %27 = arith.cmpi sle, %23, %26 : vector<1x256xi32>
    %c0_13 = arith.constant 0 : index
    %c0_14 = arith.constant 0 : index
    %c0_15 = arith.constant 0 : index
    %c0_16 = arith.constant 0 : index
    %28 = vector.load %arg2[%c0_13, %c0_14, %c0_15, %c0_16] : memref<1x1x4x256xf32, #tpu.memory_space<vmem>>, vector<1x1x4x256xf32>
    %29 = vector.shape_cast %28 : vector<1x1x4x256xf32> to vector<4x256xf32>
    %c0_17 = arith.constant 0 : index
    %c128 = arith.constant 128 : index
    %30 = vector.load %arg9[%c0_17, %c128] : memref<8x512xf32, #tpu.memory_space<vmem>>, vector<4x256xf32>
    tpu.vector_store %arg9[%c0_17, %c128], %29 {strides = array<i32>} : memref<8x512xf32, #tpu.memory_space<vmem>>, vector<4x256xf32>,
    %c0_18 = arith.constant 0 : index
    %c0_19 = arith.constant 0 : index
    %31 = vector.load %arg9[%c0_18, %c0_19] : memref<8x512xf32, #tpu.memory_space<vmem>>, vector<8x512xf32>
    %32 = vector.extract_strided_slice %31 {offsets = [4, 128], sizes = [4, 256], strides = [1, 1]} : vector<8x512xf32> to vector<4x256xf32>
    %33 = vector.extract_strided_slice %31 {offsets = [0, 111], sizes = [8, 256], strides = [1, 1]} : vector<8x512xf32> to vector<8x256xf32>
    %cst = arith.constant 0.000000e+00 : f32
    %34 = vector.shape_cast %25 : vector<1x256xi1> to vector<1x256xi1>
    %35 = vector.broadcast %34 : vector<1x256xi1> to vector<8x256xi1>
    %36 = vector.broadcast %cst : f32 to vector<8x256xf32>
    %37 = arith.select %35, %33, %36 : vector<8x256xi1>, vector<8x256xf32>
    %38 = vector.extract_strided_slice %31 {offsets = [0, 112], sizes = [8, 256], strides = [1, 1]} : vector<8x512xf32> to vector<8x256xf32>
    %39 = vector.extract_strided_slice %31 {offsets = [0, 113], sizes = [8, 256], strides = [1, 1]} : vector<8x512xf32> to vector<8x256xf32>
    %cst_20 = arith.constant 0.000000e+00 : f32
    %40 = vector.shape_cast %27 : vector<1x256xi1> to vector<1x256xi1>
    %41 = vector.broadcast %40 : vector<1x256xi1> to vector<8x256xi1>
    %42 = vector.broadcast %cst_20 : f32 to vector<8x256xf32>
    %43 = arith.select %41, %39, %42 : vector<8x256xi1>, vector<8x256xf32>
    %44 = vector.extract_strided_slice %31 {offsets = [0, 127], sizes = [8, 256], strides = [1, 1]} : vector<8x512xf32> to vector<8x256xf32>
    %cst_21 = arith.constant 0.000000e+00 : f32
    %45 = vector.shape_cast %25 : vector<1x256xi1> to vector<1x256xi1>
    %46 = vector.broadcast %45 : vector<1x256xi1> to vector<8x256xi1>
    %47 = vector.broadcast %cst_21 : f32 to vector<8x256xf32>
    %48 = arith.select %46, %44, %47 : vector<8x256xi1>, vector<8x256xf32>
    %49 = vector.extract_strided_slice %31 {offsets = [0, 128], sizes = [8, 256], strides = [1, 1]} : vector<8x512xf32> to vector<8x256xf32>
    %50 = vector.extract_strided_slice %31 {offsets = [0, 129], sizes = [8, 256], strides = [1, 1]} : vector<8x512xf32> to vector<8x256xf32>
    %cst_22 = arith.constant 0.000000e+00 : f32
    %51 = vector.shape_cast %27 : vector<1x256xi1> to vector<1x256xi1>
    %52 = vector.broadcast %51 : vector<1x256xi1> to vector<8x256xi1>
    %53 = vector.broadcast %cst_22 : f32 to vector<8x256xf32>
    %54 = arith.select %52, %50, %53 : vector<8x256xi1>, vector<8x256xf32>
    %55 = vector.extract_strided_slice %31 {offsets = [0, 143], sizes = [8, 256], strides = [1, 1]} : vector<8x512xf32> to vector<8x256xf32>
    %cst_23 = arith.constant 0.000000e+00 : f32
    %56 = vector.shape_cast %25 : vector<1x256xi1> to vector<1x256xi1>
    %57 = vector.broadcast %56 : vector<1x256xi1> to vector<8x256xi1>
    %58 = vector.broadcast %cst_23 : f32 to vector<8x256xf32>
    %59 = arith.select %57, %55, %58 : vector<8x256xi1>, vector<8x256xf32>
    %60 = vector.extract_strided_slice %31 {offsets = [0, 144], sizes = [8, 256], strides = [1, 1]} : vector<8x512xf32> to vector<8x256xf32>
    %61 = vector.extract_strided_slice %31 {offsets = [0, 145], sizes = [8, 256], strides = [1, 1]} : vector<8x512xf32> to vector<8x256xf32>
    %cst_24 = arith.constant 0.000000e+00 : f32
    %62 = vector.shape_cast %27 : vector<1x256xi1> to vector<1x256xi1>
    %63 = vector.broadcast %62 : vector<1x256xi1> to vector<8x256xi1>
    %64 = vector.broadcast %cst_24 : f32 to vector<8x256xf32>
    %65 = arith.select %63, %61, %64 : vector<8x256xi1>, vector<8x256xf32>
    %66 = tpu.concatenate %37, %38, %43, %48, %49, %54, %59, %60, %65 in 0 : vector<8x256xf32>, vector<8x256xf32>, vector<8x256xf32>, vector<8x256xf32>, vector<8x256xf32>, vector<8x256xf32>, vector<8x256xf32>, vector<8x256xf32>, vector<8x256xf32> -> vector<72x256xf32>
    %67 = arith.truncf %66 : vector<72x256xf32> to vector<72x256xbf16>
    %cst_25 = arith.constant dense<0.000000e+00> : vector<8x256xf32>
    %68 = tpu.matmul %3, %67, %cst_25 {dimension_numbers = #tpu.dot_dimension_numbers<[1], [0], [0], [1], [0, 0, 1, 1], [], []>} : vector<8x72xbf16>, vector<72x256xbf16>, vector<8x256xf32> -> vector<8x256xf32>
    %69 = vector.broadcast %5 : vector<8x1xf32> to vector<8x256xf32>
    %70 = arith.addf %68, %69 : vector<8x256xf32>
    %71 = arith.negf %70 : vector<8x256xf32>
    %72 = math.exp %71 : vector<8x256xf32>
    %cst_26 = arith.constant 1.000000e+00 : f32
    %73 = vector.broadcast %cst_26 : f32 to vector<8x256xf32>
    %74 = arith.addf %73, %72 : vector<8x256xf32>
    %75 = arith.divf %73, %74 : vector<8x256xf32>
    %76 = vector.extract_strided_slice %75 {offsets = [0, 0], sizes = [4, 256], strides = [1, 1]} : vector<8x256xf32> to vector<4x256xf32>
    %77 = vector.extract_strided_slice %75 {offsets = [4, 0], sizes = [4, 256], strides = [1, 1]} : vector<8x256xf32> to vector<4x256xf32>
    %78 = arith.mulf %76, %32 : vector<4x256xf32>
    %c4 = arith.constant 4 : index
    %c128_27 = arith.constant 128 : index
    %79 = vector.load %arg9[%c4, %c128_27] : memref<8x512xf32, #tpu.memory_space<vmem>>, vector<4x256xf32>
    tpu.vector_store %arg9[%c4, %c128_27], %78 {strides = array<i32>} : memref<8x512xf32, #tpu.memory_space<vmem>>, vector<4x256xf32>,
    %c0_28 = arith.constant 0 : index
    %c0_29 = arith.constant 0 : index
    %80 = vector.load %arg9[%c0_28, %c0_29] : memref<8x512xf32, #tpu.memory_space<vmem>>, vector<8x512xf32>
    %81 = vector.extract_strided_slice %80 {offsets = [0, 111], sizes = [8, 256], strides = [1, 1]} : vector<8x512xf32> to vector<8x256xf32>
    %cst_30 = arith.constant 0.000000e+00 : f32
    %82 = vector.shape_cast %25 : vector<1x256xi1> to vector<1x256xi1>
    %83 = vector.broadcast %82 : vector<1x256xi1> to vector<8x256xi1>
    %84 = vector.broadcast %cst_30 : f32 to vector<8x256xf32>
    %85 = arith.select %83, %81, %84 : vector<8x256xi1>, vector<8x256xf32>
    %86 = vector.extract_strided_slice %80 {offsets = [0, 112], sizes = [8, 256], strides = [1, 1]} : vector<8x512xf32> to vector<8x256xf32>
    %87 = vector.extract_strided_slice %80 {offsets = [0, 113], sizes = [8, 256], strides = [1, 1]} : vector<8x512xf32> to vector<8x256xf32>
    %cst_31 = arith.constant 0.000000e+00 : f32
    %88 = vector.shape_cast %27 : vector<1x256xi1> to vector<1x256xi1>
    %89 = vector.broadcast %88 : vector<1x256xi1> to vector<8x256xi1>
    %90 = vector.broadcast %cst_31 : f32 to vector<8x256xf32>
    %91 = arith.select %89, %87, %90 : vector<8x256xi1>, vector<8x256xf32>
    %92 = vector.extract_strided_slice %80 {offsets = [0, 127], sizes = [8, 256], strides = [1, 1]} : vector<8x512xf32> to vector<8x256xf32>
    %cst_32 = arith.constant 0.000000e+00 : f32
    %93 = vector.shape_cast %25 : vector<1x256xi1> to vector<1x256xi1>
    %94 = vector.broadcast %93 : vector<1x256xi1> to vector<8x256xi1>
    %95 = vector.broadcast %cst_32 : f32 to vector<8x256xf32>
    %96 = arith.select %94, %92, %95 : vector<8x256xi1>, vector<8x256xf32>
    %97 = vector.extract_strided_slice %80 {offsets = [0, 128], sizes = [8, 256], strides = [1, 1]} : vector<8x512xf32> to vector<8x256xf32>
    %98 = vector.extract_strided_slice %80 {offsets = [0, 129], sizes = [8, 256], strides = [1, 1]} : vector<8x512xf32> to vector<8x256xf32>
    %cst_33 = arith.constant 0.000000e+00 : f32
    %99 = vector.shape_cast %27 : vector<1x256xi1> to vector<1x256xi1>
    %100 = vector.broadcast %99 : vector<1x256xi1> to vector<8x256xi1>
    %101 = vector.broadcast %cst_33 : f32 to vector<8x256xf32>
    %102 = arith.select %100, %98, %101 : vector<8x256xi1>, vector<8x256xf32>
    %103 = vector.extract_strided_slice %80 {offsets = [0, 143], sizes = [8, 256], strides = [1, 1]} : vector<8x512xf32> to vector<8x256xf32>
    %cst_34 = arith.constant 0.000000e+00 : f32
    %104 = vector.shape_cast %25 : vector<1x256xi1> to vector<1x256xi1>
    %105 = vector.broadcast %104 : vector<1x256xi1> to vector<8x256xi1>
    %106 = vector.broadcast %cst_34 : f32 to vector<8x256xf32>
    %107 = arith.select %105, %103, %106 : vector<8x256xi1>, vector<8x256xf32>
    %108 = vector.extract_strided_slice %80 {offsets = [0, 144], sizes = [8, 256], strides = [1, 1]} : vector<8x512xf32> to vector<8x256xf32>
    %109 = vector.extract_strided_slice %80 {offsets = [0, 145], sizes = [8, 256], strides = [1, 1]} : vector<8x512xf32> to vector<8x256xf32>
    %cst_35 = arith.constant 0.000000e+00 : f32
    %110 = vector.shape_cast %27 : vector<1x256xi1> to vector<1x256xi1>
    %111 = vector.broadcast %110 : vector<1x256xi1> to vector<8x256xi1>
    %112 = vector.broadcast %cst_35 : f32 to vector<8x256xf32>
    %113 = arith.select %111, %109, %112 : vector<8x256xi1>, vector<8x256xf32>
    %114 = tpu.concatenate %85, %86, %91, %96, %97, %102, %107, %108, %113 in 0 : vector<8x256xf32>, vector<8x256xf32>, vector<8x256xf32>, vector<8x256xf32>, vector<8x256xf32>, vector<8x256xf32>, vector<8x256xf32>, vector<8x256xf32>, vector<8x256xf32> -> vector<72x256xf32>
    %115 = arith.truncf %114 : vector<72x256xf32> to vector<72x256xbf16>
    %cst_36 = arith.constant dense<0.000000e+00> : vector<4x256xf32>
    %116 = tpu.matmul %4, %115, %cst_36 {dimension_numbers = #tpu.dot_dimension_numbers<[1], [0], [0], [1], [0, 0, 1, 1], [], []>} : vector<4x72xbf16>, vector<72x256xbf16>, vector<4x256xf32> -> vector<4x256xf32>
    %117 = vector.broadcast %6 : vector<4x1xf32> to vector<4x256xf32>
    %118 = arith.addf %116, %117 : vector<4x256xf32>
    %119 = math.tanh %118 : vector<4x256xf32>
    %120 = arith.subf %119, %32 : vector<4x256xf32>
    %121 = arith.mulf %77, %120 : vector<4x256xf32>
    %122 = arith.addf %32, %121 : vector<4x256xf32>
    %c4_37 = arith.constant 4 : index
    %c128_38 = arith.constant 128 : index
    %123 = vector.load %arg9[%c4_37, %c128_38] : memref<8x512xf32, #tpu.memory_space<vmem>>, vector<4x256xf32>
    tpu.vector_store %arg9[%c4_37, %c128_38], %122 {strides = array<i32>} : memref<8x512xf32, #tpu.memory_space<vmem>>, vector<4x256xf32>,
    %c0_39 = arith.constant 0 : index
    %c0_40 = arith.constant 0 : index
    %c0_41 = arith.constant 0 : index
    %124 = vector.load %arg8[%c0_39, %c0_40, %c0_41] : memref<1x4x256xf32, #tpu.memory_space<vmem>>, vector<1x4x256xf32>
    %125 = vector.shape_cast %124 : vector<1x4x256xf32> to vector<4x256xf32>
    %126 = vector.shape_cast %122 : vector<4x256xf32> to vector<1x4x256xf32>
    tpu.vector_store %arg8[%c0_39, %c0_40, %c0_41], %126 {strides = array<i32>} : memref<1x4x256xf32, #tpu.memory_space<vmem>>, vector<1x4x256xf32>,
    return
  }
  func.func @transform_0(%arg0: i32, %arg1: i32) -> (i32, i32, i32, i32) {
    %c0_i32 = arith.constant 0 : i32
    %c0_i32_0 = arith.constant 0 : i32
    %c0_i32_1 = arith.constant 0 : i32
    return %arg0, %arg1, %c0_i32, %c0_i32_0 : i32, i32, i32, i32
  }
  func.func @transform_1(%arg0: i32, %arg1: i32) -> (i32, i32, i32) {
    %c0_i32 = arith.constant 0 : i32
    %c0_i32_0 = arith.constant 0 : i32
    %c0_i32_1 = arith.constant 0 : i32
    return %arg0, %c0_i32, %c0_i32_0 : i32, i32, i32
  }
  func.func @transform_2(%arg0: i32, %arg1: i32) -> (i32, i32) {
    %c0_i32 = arith.constant 0 : i32
    %c0_i32_0 = arith.constant 0 : i32
    %c0_i32_1 = arith.constant 0 : i32
    return %c0_i32, %c0_i32_0 : i32, i32
  }
  func.func @transform_3(%arg0: i32, %arg1: i32) -> (i32, i32) {
    %c0_i32 = arith.constant 0 : i32
    %c0_i32_0 = arith.constant 0 : i32
    %c0_i32_1 = arith.constant 0 : i32
    return %c0_i32, %c0_i32_0 : i32, i32
  }
  func.func @transform_4(%arg0: i32, %arg1: i32) -> (i32, i32) {
    %c0_i32 = arith.constant 0 : i32
    %c0_i32_0 = arith.constant 0 : i32
    %c0_i32_1 = arith.constant 0 : i32
    return %c0_i32, %c0_i32_0 : i32, i32
  }
  func.func @transform_5(%arg0: i32, %arg1: i32) -> (i32, i32) {
    %c0_i32 = arith.constant 0 : i32
    %c0_i32_0 = arith.constant 0 : i32
    %c0_i32_1 = arith.constant 0 : i32
    return %c0_i32, %c0_i32_0 : i32, i32
  }
  func.func @transform_6(%arg0: i32, %arg1: i32) -> (i32, i32, i32) {
    %c0_i32 = arith.constant 0 : i32
    %c0_i32_0 = arith.constant 0 : i32
    return %arg0, %arg1, %c0_i32 : i32, i32, i32
  }
}

</mosaic_0001>

<bundles_post_ra>
// kernel: tpu_custom_call.1
= control target key start
LH: loop header
LB: loop body
LE: loop exit
PB: predicated region body
PF: predicated region fallthrough
CT: control target
= control target key end

     0   :  { %11 = vsyncpa [#allocation4], 0  ;;  %s1736_s0 = inlined_call_operand.hbm [shape: f32[2,1,4,256], index: 0, kind: input, shape index: {}]   ;;  %s1737_s1 = inlined_call_operand.hbm [shape: f32[2,4,256], index: 1, kind: input, shape index: {}]   ;;  %s1738_s2 = inlined_call_operand.vmem [shape: bf16[8,72], index: 2, kind: input, shape index: {}]   ;;  %s1739_s3 = inlined_call_operand.vmem [shape: f32[8,1], index: 3, kind: input, shape index: {}]   ;;  %s1740_s4 = inlined_call_operand.vmem [shape: bf16[4,72], index: 4, kind: input, shape index: {}]   ;;  %s1741_s5 = inlined_call_operand.vmem [shape: f32[4,1], index: 5, kind: input, shape index: {}]   ;;  %s1742_s6 = inlined_call_operand.hbm [shape: f32[2,4,256], index: 6, kind: output, shape index: {}]  }
   0x1   :  { %13 = vsyncpa [#allocation4 + $0x1], 0 }
   0x2   :  { %14 = vsyncpa [#allocation7], 0 }
   0x3   :  { %16 = vsyncpa [#allocation7 + $0x1], 0 }
   0x4   :  { %17 = vsyncpa [#allocation5], 0 }
   0x5   :  { %19 = vsyncpa [#allocation5 + $0x1], 0  ;;  %s1353_s21 = smov 0   ;;  %s1355_s22 = smov 0  }
   0x6   :  { %s1357_s23 = smov 0   ;;  %s1359_s24 = smov 0  }
   0x7   :  { %s1361_s25 = smov 0   ;;  %s1363_s26 = smov 0  }
   0x8 LB: > { %1755 = sst [smem:[#allocation12_spill]] %s1301_s25  ;;  %s911_s27 = sadd.s32 4294967295, %s1305_s26   ;;  %s1305_s26 = sphi %s1363_s26, %s25_s26   ;;  %s1301_s25 = sphi %s1361_s25, %s1798_s25   ;;  %s1297_s24 = sphi %s1359_s24, %s1797_s24   ;;  %s1293_s23 = sphi %s1357_s23, %s1801_s23   ;;  %s1289_s22 = sphi %s1355_s22, %s1800_s22   ;;  %s1285_s21 = sphi %s1353_s21, %s1799_s21  }
   0x9   : > { %s912_s28 = sadd.s32 4294967294, %s1305_s26   ;;  %s37_s29 = sadd.s32 1, %s1301_s25 }
   0xa   : > { %s46_s30 = sadd.s32 1, %s1293_s23  ;;  %p39_p0 = scmp.ge.s32.totalorder %s37_s29, 2 }
   0xb   : > { %p53_p1 = scmp.ne.s32.totalorder %s1293_s23, %s1289_s22  ;;  %p54_p2 = scmp.eq.s32.totalorder %s1305_s26, 0 }
   0xc   : > { %p59_p3 = scmp.ne.s32.totalorder %s1289_s22, %s1285_s21  ;;  %s1803_s29 = smov (%p39_p0, %s37_s29), 0 }
   0xd   : > { %1756 = sst [smem:[#allocation13_spill]] %s1803_s29  ;;  %p1394_p4 = por %p54_p2, %p53_p1 }
   0xe   : > { %p60_p5 = scmp.eq.s32.totalorder %s911_s27, 0  ;;  %s41_s8 = ssub.s32 %s1301_s25, %s1803_s29 }
   0xf   : > { %p195_p6 = scmp.eq.s32.totalorder %s911_s27, 1  ;;  %p44_p7 = scmp.eq.s32.totalorder %s41_s8, 0 }
  0x10   : > { %p1400_p8 = por %p60_p5, %p59_p3  ;;  %p201_p10 = scmp.eq.s32.totalorder %s912_s28, 1 }
  0x11   : > { %p1404_p9 = por %p195_p6, %p53_p1  ;;  %p914_p12 = scmp.ge.s32.totalorder %s1305_s26, 2 }
  0x12   : > { %s1409_s11 = scalar_select %p44_p7, %s1293_s23, %s46_s30  }
  0x13   : > { %p1411_p11 = por %p201_p10, %p59_p3  ;;  %p1004_p13 = scmp.lt.s32.totalorder %s1305_s26, 2 }
  0x14   : > { %1760 = sst [smem:[#allocation14_spill]] %s1409_s11  ;;  %s233_s13 = sand.u32 1, %s1293_s23  }
  0x15   : > { %s915_s14 = sshll.u32 %s233_s13, 3  ;;  %s984_s15 = sshll.u32 %s1301_s25, 3 }
  0x16   : > { %s244_s18 = scalar_lea.hbm %s1736_s0, %s984_s15  ;;  %s237_s19 = scalar_lea.vmem [#allocation3], %s915_s14 }
  0x17   : > { %s248_s20 = sshll.u32 %s237_s19, 4  ;;  %s246_s27 = sshll.u32 %s244_s18, 4  ;;  %s249_s20 = int_to_ptr.vmem [resolvable:$true] %s248_s20  ;;  %s247_s27 = int_to_ptr.hbm [resolvable:$true] %s246_s27 }
  0x18   : > { %p994_p0 = pnand %p1004_p13, %p1394_p4  ;;  %p921_p1 = scmp.ge.s32.totalorder %s1305_s26, 1 }
  0x19   : > { %p273_p2 = scmp.lt.s32.totalorder %s1305_s26, 3  ;;  %s234_s28 = scalar_lea.sflag [#allocation4], %s233_s13 }
  0x1a   : > { %996 = dma.hbm_to_vmem [thread:$0]  (!%p994_p0), %s247_s27, 128, %s249_s20, %s234_s28  }
  0x1b   : > { %p274_p3 = pnand %p921_p1, %p273_p2  ;;  %s264_s29 = scalar_lea.hbm %s1737_s1, %s984_s15 }
  0x1c   : > { %s259_s25 = scalar_lea.vmem [#allocation6], %s915_s14  ;;  %s266_s16 = sshll.u32 %s264_s29, 4  ;;  %s267_s16 = int_to_ptr.hbm [resolvable:$true] %s266_s16 }
  0x1d   : > { %s268_s11 = sshll.u32 %s259_s25, 4  ;;  %s256_s17 = scalar_lea.sflag [#allocation7], %s233_s13  ;;  %s269_s11 = int_to_ptr.vmem [resolvable:$true] %s268_s11 }
  0x1e   : > { %999 = dma.hbm_to_vmem [thread:$0]  (!%p994_p0), %s267_s16, 128, %s269_s11, %s256_s17  }
  0x1f   : > { %277 = sbr.rel (%p274_p3) target bundleno = 702 (0x2be), region = 44  ;;  %s1430_s7 = sand.u32 (!%p274_p3), 1, %s1289_s22  }
  0x20   : > { %s1433_s18 = sshll.u32 (!%p274_p3), %s1430_s7, 3  ;;  %s280_s19 = scalar_lea.sflag (!%p274_p3), [#allocation4], %s1430_s7 }
  0x21   : > { %s283_s20 = scalar_lea.vmem (!%p274_p3), [#allocation3], %s1433_s18 }
  0x24   : > { %1272 = dma.done.wait (%p1400_p8), %s280_s19, 128  }
  0x25   : > { %1274 = vsyncadd (%p1400_p8), %s280_s19, 4294967168  ;;  %s290_s25 = scalar_lea.sflag [#allocation7], %s1430_s7  ;;  %s293_s29 = scalar_lea.vmem [#allocation6], %s1433_s18 }
  0x26   : > { %1276 = dma.done.wait (%p1400_p8), %s290_s25, 128  }
  0x27   : > { %1278 = vsyncadd (%p1400_p8), %s290_s25, 4294967168  ;;  %v1307_v0 = vmov 0.0   ;;  %s1308_s11 = smov 113   ;;  %s1309_s13 = smov 111   ;;  %v337_v1 = vld [vmem:[%s293_s29] sm:$0xff]  ;;  %v382_v2 = vld [vmem:[%s283_s20] sm:$0xff]  ;;  %v351_v13 = vlaneseq }
  0x28   : > { %463 = vrot.lane.b32.xlu1 %v1307_v0, %s1308_s11  ;;  %334 = vst [vmem:[#allocation2] sm:$0xff] %v1307_v0  ;;  %476 = vrot.lane.b32.xlu0 %v1307_v0, %s1309_s13  ;;  %s1310_s14 = smov 112   ;;  %s1311_s9 = smov 127   ;;  %vm478_vm1 = vcmask 908288   ;;  %vm526_vm3 = vcmask 1043456   ;;  %vm1754_vm4 = vcmask 924672  }
  0x29   : > { %500 = vrot.lane.b32.xlu2 %v1307_v0, %s1310_s14  ;;  %335 = vst [vmem:[#allocation2 + $0x18] sm:$0xff] %v1307_v0  ;;  %s1312_s15 = smov 1   ;;  %s1313_s27 = smov 15   ;;  %v352_v14 = vand.u32 127, %v351_v13  ;;  %vm1753_vm5 = vcmask 916480   ;;  %vm1747_vm8 = vcmask 1039360  }
  0x2a   : > { %340 = vst [vmem:[#allocation1 + $0x1] ss:$2 sm:$0xff] %v337_v1  ;;  %s1314_s28 = smov 17   ;;  %s1315_s30 = smov 16   ;;  %v349_v46 = vld [vmem:[%s1739_s3] sm:$0xff]  ;;  %vm1316_vm9 = vmmov 1  }
  0x2b   : > { %v353_v18 = vadd.s32 128, %v352_v14  ;;  %v358_v19 = vand.u32 15, %v352_v14  ;;  %v1317_v59 = vmov 0   ;;  %vm1746_vm12 = vcmask 121856   ;;  %v348_v25 = vld [vmem:[%s1740_s4] sm:$0x3] }
  0x2c   : > { %1105 = vset.pattern.permute.xlu1 %v1317_v59  ;;  %1146 = vset.pattern.permute.xlu0 %v1317_v59  ;;  %vm1745_vm13 = vcmask 7168   ;;  %s786_s8 = scalar_lea.sflag [#allocation5], %s1430_s7  ;;  %s1239_s20 = scalar_lea.hbm %s1742_s6, 16 }
  0x2d   : > { %v365_v20 = vand.u32 15, %v353_v18  ;;  %vm1489_vm0 = vcmp.le.s32.totalorder %v358_v19, 14  ;;  %vm1503_vm6 = vcmp.ge.s32.totalorder %v358_v19, 1 }
  0x2e   : > { %vm1524_vm10 = vmpackc.low %vm1316_vm9, %vm1503_vm6 }
  0x2f   : > { %vm1493_vm2 = vcmp.le.s32.totalorder %v365_v20, 14  ;;  %vm1509_vm7 = vcmp.ge.s32.totalorder %v365_v20, 1  ;;  %vm1545_vm14 = vmpackc.low %vm1489_vm0, %vm1316_vm9 }
  0x30   : > { %450 = vrot.lane.b32.xlu1 %v1307_v0, %s1311_s9  ;;  %vm1532_vm11 = vmpackc.low %vm1316_vm9, %vm1509_vm7 }
  0x31   : > { %v341_v3 = vld.sshfl [vmem:[#allocation1] sm:$0xff pattern:$0x75316420]  ;;  %v342_v4 = vld.sshfl [vmem:[#allocation1 + $0x8] sm:$0xff pattern:$0x75316420]  ;;  %vm1552_vm15 = vmpackc.low %vm1493_vm2, %vm1316_vm9 }
  0x32   : > { %384 = vst [vmem:[#allocation1] ss:$2 sm:$0xff] %v382_v2  ;;  %vm1752_vm9 = vmpackc.low %vm1503_vm6, %vm1489_vm0 }
  0x33   : > { %345 = vst [vmem:[#allocation2] sm:$0xf0] %v341_v3 }
  0x34   : > { %346 = vst [vmem:[#allocation2 + $0x18] sm:$0xf0] %v342_v4 }
  0x39   : > { %v385_v5 = vld.sshfl [vmem:[#allocation1] sm:$0xff pattern:$0x75316420]  ;;  %v386_v6 = vld.sshfl [vmem:[#allocation1 + $0x8] sm:$0xff pattern:$0x75316420] }
  0x3a   : > { %389 = vst [vmem:[#allocation2] sm:$0xf] %v385_v5 }
  0x3b   : > { %390 = vst [vmem:[#allocation2 + $0x18] sm:$0xf] %v386_v6 }
  0x41   : > { %v1457_v7 = vld [vmem:[#allocation2] sm:$0xff] }
  0x42   : > { %v1459_v8 = vld [vmem:[#allocation2 + $0x18] sm:$0xff]  ;;  %v1090_v10 = vpack.i.bf16 %v1457_v7, %v1307_v0 }
  0x43   : > { %v1070_v9 = vpack.i.bf16 %v1459_v8, %v1457_v7 }
  0x45   : > { %1071 = vrot.lane.b32.xlu1 %v1070_v9, %s1308_s11  ;;  %1066 = vrot.lane.b32.xlu0 %v1070_v9, %s1309_s13 }
  0x46   : > { %1076 = vrot.lane.b32.xlu2 %v1070_v9, %s1310_s14 }
  0x4d   : > { %1081 = vrot.lane.b32.xlu0 %v1070_v9, %s1311_s9  ;;  %1091 = vrot.lane.b32.xlu1 %v1090_v10, %s1312_s15 }
  0x4e   : > { %1086 = vrot.lane.b32.xlu2 %v1090_v10, %s1313_s27 }
  0x55   : > { %423 = vrot.lane.b32.xlu0 %v1459_v8, %s1313_s27  ;;  %406 = vrot.lane.b32.xlu1 %v1459_v8, %s1314_s28 }
  0x56   : > { %436 = vrot.lane.b32.xlu2 %v1459_v8, %s1312_s15 }
  0x5d   : > { %1096 = vrot.lane.b32.xlu0 %v1090_v10, %s1314_s28  ;;  %519 = vperm.xlu1 %1105, %v349_v46  }
  0x5e   : > { %1101 = vrot.lane.b32.xlu2 %v1090_v10, %s1315_s30 }
  0x65   : > { %489 = vrot.lane.b32.xlu0 %v1459_v8, %s1315_s30  ;;  %705 = vrot.lane.b32.xlu1 %v1307_v0, %s1310_s14 }
  0x66   : > { %671 = vrot.lane.b32.xlu2 %v1307_v0, %s1308_s11 }
  0x6d   : > { %683 = vrot.lane.b32.xlu0 %v1307_v0, %s1309_s13 }
  0x75   : > { %659 = vrot.lane.b32.xlu0 %v1307_v0, %s1311_s9 }
  0x83   : > { %v501_v11 = vpop.permute.xlu2 %500 }
  0x9a   : > { %v464_v12 = vpop.permute.xlu1 %463  ;;  %v477_v17 = vpop.permute.xlu0 %476 }
  0xa0   : > { %v1077_v15 = vpop.permute.xlu2 %1076 }
  0xa1   : > { %v1078_v26 = vunpack.i.l.bf16 %v1077_v15  ;;  %v1079_v30 = vunpack.i.h.bf16 %v1077_v15 }
  0xa2   : > { %v451_v16 = vpop.permute.xlu1 %450 }
  0xa3   : > { %v503_v40 = vsel %vm1753_vm5, %v1078_v26, %v1079_v30  ;;  %v504_v52 = vsel %vm1753_vm5, %v1079_v30, %v501_v11 }
  0xa8   : > { %v1487_v21 = vpop.permute.xlu2 %1086 }
  0xa9   : > { %v1089_v48 = vunpack.i.h.bf16 %v1487_v21  ;;  %v1088_v49 = vunpack.i.l.bf16 %v1487_v21 }
  0xab   : > { %v426_v2 = vsel %vm1746_vm12, %v1088_v49, %v1089_v48 }
  0xb0   : > { %v437_v45 = vpop.permute.xlu2 %436 }
  0xb7   : > { %v1072_v22 = vpop.permute.xlu1 %1071  ;;  %v1067_v23 = vpop.permute.xlu0 %1066 }
  0xb8   : > { %v1073_v27 = vunpack.i.l.bf16 %v1072_v22  ;;  %v1069_v28 = vunpack.i.h.bf16 %v1067_v23  ;;  %v1068_v29 = vunpack.i.l.bf16 %v1067_v23  ;;  %v1074_v31 = vunpack.i.h.bf16 %v1072_v22  ;;  %v1102_v13 = vpop.permute.xlu2 %1101  ;;  %v347_v23 = vld [vmem:[%s1738_s2] sm:$0xf] }
  0xb9   : > { %v1104_v14 = vunpack.i.h.bf16 %v1102_v13  ;;  %v1103_v15 = vunpack.i.l.bf16 %v1102_v13 }
  0xba   : > { %v479_v32 = vsel %vm478_vm1, %v1068_v29, %v1069_v28  ;;  %v480_v33 = vsel %vm478_vm1, %v1069_v28, %v477_v17  ;;  %v466_v39 = vsel %vm1754_vm4, %v1073_v27, %v1074_v31  ;;  %v467_v44 = vsel %vm1754_vm4, %v1074_v31, %v464_v12 }
  0xbb   : > { %v483_v34 = vsel %vm1489_vm0, %v479_v32, 0.0  ;;  %v484_v35 = vsel %vm1493_vm2, %v480_v33, 0.0  ;;  %v926_v51 = vpack.c.bf16 %v503_v40, %v466_v39  ;;  %v939_v60 = vpack.c.bf16 %v504_v52, %v467_v44 }
  0xbc   : > { %v515_v37 = vpack.c.bf16 %v483_v34, %v483_v34  ;;  %v516_v38 = vpack.c.bf16 %v484_v35, %v484_v35 }
  0xbe   : > { %v528_v42 = vsel %vm526_vm3, %v515_v37, 0  ;;  %v531_v43 = vsel %vm526_vm3, %v516_v38, 0 }
  0xbf   : > { %v1082_v47 = vpop.permute.xlu0 %1081  ;;  %536 = vmatpush.bf16.msra.mxu0 %v528_v42  ;;  %549 = vmatpush.bf16.msra.mxu1 %v531_v43  ;;  %v1092_v53 = vpop.permute.xlu1 %1091 }
  0xc0   : > { %v1084_v54 = vunpack.i.h.bf16 %v1082_v47  ;;  %v1083_v55 = vunpack.i.l.bf16 %v1082_v47  ;;  %v1094_v57 = vunpack.i.h.bf16 %v1092_v53  ;;  %v1093_v58 = vunpack.i.l.bf16 %v1092_v53 }
  0xc2   : > { %v453_v61 = vsel %vm1747_vm8, %v1083_v55, %v1084_v54  ;;  %v454_v62 = vsel %vm1747_vm8, %v1084_v54, %v451_v16  ;;  %v439_v3 = vsel %vm1745_vm13, %v1093_v58, %v1094_v57  ;;  %v440_v6 = vsel %vm1745_vm13, %v1094_v57, %v437_v45  ;;  %vm1748_vm13 = vmpackc.low %vm1509_vm7, %vm1493_vm2 }
  0xc3   : > { %927 = vmatpush.bf16.msk.msra.mxu0 %vm1524_vm10, %v926_v51  ;;  %940 = vmatpush.bf16.msk.msra.mxu1 %vm1532_vm11, %v939_v60  ;;  %v929_v4 = vpack.c.bf16 %v453_v61, %v1457_v7  ;;  %v942_v5 = vpack.c.bf16 %v454_v62, %v1459_v8  ;;  %v932_v10 = vpack.c.bf16 %v439_v3, %v426_v2  ;;  %vm1751_vm8 = vcmask 138240  }
  0xc4   : > { %v597_v54 = vrot.slane %v1457_v7, 4 }
  0xc7   : > { %v424_v9 = vpop.permute.xlu0 %423  ;;  %930 = vmatpush.bf16.msk.msra.mxu0 %vm1545_vm14, %v929_v4  ;;  %943 = vmatpush.bf16.msk.msra.mxu1 %vm1552_vm15, %v942_v5  ;;  %v407_v22 = vpop.permute.xlu1 %406 }
  0xc8   : > { %v427_v11 = vsel %vm1746_vm12, %v1089_v48, %v424_v9  ;;  %vm1750_vm12 = vcmask 130048  }
  0xc9   : > { %v945_v12 = vpack.c.bf16 %v440_v6, %v427_v11  ;;  %v492_v19 = vsel %vm1750_vm12, %v1103_v15, %v1104_v14  ;;  %v598_v6 = vrot.slane %v1459_v8, 4 }
  0xcb   : > { %933 = vmatpush.bf16.msk.msra.mxu0 %vm1752_vm9, %v932_v10  ;;  %946 = vmatpush.bf16.msk.msra.mxu1 %vm1748_vm13, %v945_v12  ;;  %vm1749_vm13 = vcmask 588800  }
  0xcf   : > { %v1097_v16 = vpop.permute.xlu0 %1096  ;;  %v520_v30 = vpop.permute.xlu1 %519 }
  0xd0   : > { %v1099_v17 = vunpack.i.h.bf16 %v1097_v16  ;;  %v1098_v18 = vunpack.i.l.bf16 %v1097_v16 }
  0xd2   : > { %v409_v20 = vsel %vm1751_vm8, %v1098_v18, %v1099_v17  ;;  %v410_v27 = vsel %vm1751_vm8, %v1099_v17, %v407_v22 }
  0xd3   : > { %v935_v21 = vpack.c.bf16 %v492_v19, %v409_v20 }
  0xd5   : > { %936 = vmatpush.bf16.msk.msra.mxu0 %vm1524_vm10, %v935_v21 }
  0xd7   : > { %v490_v26 = vpop.permute.xlu0 %489 }
  0xd8   : > { %v493_v28 = vsel %vm1750_vm12, %v1104_v14, %v490_v26  ;;  %937 = vmatmul.msk.bf16.vlgmr.msra.gmra.mxu0 %vm1749_vm13, %v347_v23 }
  0xd9   : > { %v948_v29 = vpack.c.bf16 %v493_v28, %v410_v27 }
  0xdb   : > { %949 = vmatpush.bf16.msk.msra.mxu1 %vm1532_vm11, %v948_v29 }
  0xde   : > { %950 = vmatmul.msk.bf16.vlgmr.msra.gmra.mxu1 %vm1749_vm13, %v347_v23 }
  0xdf   : > { %v684_v19 = vpop.permute.xlu0 %683 }
 0x155   : > { %v542_v31 = vpop.f32.mrf.mxu0 }
 0x156   : > { %v543_v32 = vadd.f32 %v542_v31, %v520_v30 }
 0x158   : > { %v951_v33 = vmul.f32 -1.442695, %v543_v32  ;;  %v706_v32 = vpop.permute.xlu1 %705 }
 0x15a   : > { %1147 = vpow2.f32 %v951_v33  ;;  %v660_v33 = vpop.permute.xlu0 %659 }
 0x15b   : > { %v555_v34 = vpop.f32.mrf.mxu1 }
 0x15c   : > { %v556_v35 = vadd.f32 %v555_v34, %v520_v30 }
 0x15d   : > { %v544_v37 = vpop.f32.mrf.mxu0 }
 0x15e   : > { %v952_v38 = vmul.f32 -1.442695, %v556_v35 }
 0x160   : > { %v1148_v39 = vpop.eup %1147  ;;  %1149 = vpow2.f32 %v952_v38 }
 0x161   : > { %v565_v40 = vadd.f32 1.0, %v1148_v39 }
 0x163   : > { %1151 = vrcp.f32 %v565_v40  ;;  %v557_v42 = vpop.f32.mrf.mxu1  ;;  %v578_v48 = vand.u32 2147483648, %v565_v40  ;;  %vm572_vm13 = vweird.f32 %v565_v40  ;;  %v576_v51 = vand.u32 2147483647, %v565_v40 }
 0x165   : > { %v579_v57 = vor.u32 1.1754944e-38, %v578_v48  ;;  %vm577_vm9 = vcmp.eq.f32.partialorder %v576_v51, 8.507059e+37 }
 0x166   : > { %v1150_v43 = vpop.eup %1149 }
 0x167   : > { %v566_v44 = vadd.f32 1.0, %v1150_v43 }
 0x169   : > { %v1152_v45 = vpop.eup %1151  ;;  %1153 = vrcp.f32 %v566_v44  ;;  %v593_v61 = vand.u32 2147483648, %v566_v44  ;;  %v591_v3 = vand.u32 2147483647, %v566_v44  ;;  %vm587_vm4 = vweird.f32 %v566_v44 }
 0x16a   : > { %v568_v46 = vmul.f32 %v1152_v45, %v565_v40  ;;  %vm573_vm12 = vweird.f32 %v1152_v45 }
 0x16b   : > { %vm574_vm8 = vmor %vm572_vm13, %vm573_vm12  ;;  %v594_v9 = vor.u32 1.1754944e-38, %v593_v61  ;;  %vm1782_vm13 = vcmask 1039360  }
 0x16c   : > { %v569_v47 = vsub.f32 1.0, %v568_v46 }
 0x16e   : > { %v570_v49 = vmul.f32 %v1152_v45, %v569_v47 }
 0x16f   : > { %v1154_v52 = vpop.eup %1153 }
 0x170   : > { %v571_v53 = vadd.f32 %v1152_v45, %v570_v49  ;;  %v583_v55 = vmul.f32 %v1154_v52, %v566_v44  ;;  %vm588_vm5 = vweird.f32 %v1154_v52 }
 0x171   : > { %vm589_vm12 = vmor %vm587_vm4, %vm588_vm5 }
 0x172   : > { %v575_v58 = vsel %vm574_vm8, %v1152_v45, %v571_v53  ;;  %v584_v59 = vsub.f32 1.0, %v583_v55  ;;  %vm592_vm8 = vcmp.eq.f32.partialorder %v591_v3, 8.507059e+37  ;;  %v350_v45 = vld [vmem:[%s1741_s5] sm:$0xf] }
 0x173   : > { %v1600_v60 = vsel %vm577_vm9, %v579_v57, %v575_v58  ;;  %vm1783_vm9 = vmmov %vm1782_vm13 }
 0x174   : > { %v601_v62 = vmul.f32 %v597_v54, %v1600_v60  ;;  %v585_v2 = vmul.f32 %v1154_v52, %v584_v59 }
 0x176   : > { %v605_v4 = vrot.slane %v601_v62, 4  ;;  %v586_v5 = vadd.f32 %v1154_v52, %v585_v2 }
 0x178   : > { %609 = vst [vmem:[#allocation2] sm:$0xf0] %v605_v4  ;;  %v590_v10 = vsel %vm589_vm12, %v1154_v52, %v586_v5  ;;  %vm1784_vm12 = vcmask 121856  }
 0x179   : > { %v1606_v11 = vsel %vm592_vm8, %v594_v9, %v590_v10  ;;  %vm1785_vm8 = vcmask 7168  }
 0x17a   : > { %v602_v12 = vmul.f32 %v598_v6, %v1606_v11 }
 0x17c   : > { %v606_v13 = vrot.slane %v602_v12, 4 }
 0x17e   : > { %610 = vst [vmem:[#allocation2 + $0x18] sm:$0xf0] %v606_v13 }
 0x17f   : > { %v1611_v14 = vld [vmem:[#allocation2] sm:$0xff] }
 0x180   : > { %v1131_v17 = vpack.i.bf16 %v1611_v14, %v1307_v0  ;;  %v672_v0 = vpop.permute.xlu2 %671 }
 0x185   : > { %v1613_v15 = vld [vmem:[#allocation2 + $0x18] sm:$0xff] }
 0x186   : > { %v1116_v16 = vpack.i.bf16 %v1613_v15, %v1611_v14 }
 0x188   : > { %1117 = vrot.lane.b32.xlu0 %v1116_v16, %s1310_s14  ;;  %1112 = vrot.lane.b32.xlu1 %v1116_v16, %s1308_s11 }
 0x189   : > { %1107 = vrot.lane.b32.xlu2 %v1116_v16, %s1309_s13  ;;  %s986_s13 = sshll.u32 %s1297_s24, 3 }
 0x190   : > { %1132 = vrot.lane.b32.xlu0 %v1131_v17, %s1312_s15  ;;  %1127 = vrot.lane.b32.xlu1 %v1131_v17, %s1313_s27 }
 0x191   : > { %1122 = vrot.lane.b32.xlu2 %v1116_v16, %s1311_s9 }
 0x198   : > { %622 = vrot.lane.b32.xlu0 %v1613_v15, %s1314_s28  ;;  %646 = vrot.lane.b32.xlu1 %v1613_v15, %s1312_s15  ;;  %s799_s15 = scalar_lea.hbm %s1742_s6, %s986_s13 }
 0x199   : > { %634 = vrot.lane.b32.xlu2 %v1613_v15, %s1313_s27  ;;  %s327_s27 = scalar_lea.vmem [#allocation8], %s1433_s18 }
 0x1a0   : > { %1142 = vrot.lane.b32.xlu1 %v1131_v17, %s1315_s30  ;;  %723 = vperm.xlu0 %1146, %v350_v45  }
 0x1a1   : > { %1137 = vrot.lane.b32.xlu2 %v1131_v17, %s1314_s28  ;;  %s801_s28 = sshll.u32 %s327_s27, 4  ;;  %s802_s28 = int_to_ptr.vmem [resolvable:$true] %s801_s28 }
 0x1a9   : > { %695 = vrot.lane.b32.xlu2 %v1613_v15, %s1315_s30  ;;  %s803_s30 = sshll.u32 %s799_s15, 4  ;;  %s804_s30 = int_to_ptr.hbm [resolvable:$true] %s803_s30 }
 0x1aa   : > { %s1233_s16 = sshra.s32 %s804_s30, 4  ;;  %s1234_s16 = int_to_ptr.hbm [resolvable:$true] %s1233_s16 }
 0x1ab   : > { %s1235_s17 = scalar_lea.hbm %s1234_s16, 8  ;;  %p1240_p7 = scmp.lt.s32.totalorder %s1234_s16, %s1742_s6 }
 0x1ac   : > { %p1236_p4 = scmp.ne.s32.totalorder %s1234_s16, %s1235_s17  ;;  %p1241_p8 = scmp.lt.s32.totalorder %s1239_s20, %s1235_s17 }
 0x1ae   : > { %p1237_p5 = pnand %p1236_p4, %p1404_p9  ;;  %p1242_p10 = por %p1241_p8, %p1240_p7 }
 0x1b0   : > { %p1238_p6 = pneg %p1237_p5 }
 0x1b2   : > { %p1243_p13 = pnand %p1242_p10, %p1238_p6 }
 0x1e3   : > { %v1108_v18 = vpop.permute.xlu2 %1107 }
 0x1e4   : > { %v1110_v20 = vunpack.i.h.bf16 %v1108_v18  ;;  %v1109_v21 = vunpack.i.l.bf16 %v1108_v18 }
 0x1e6   : > { %v686_v22 = vsel %vm478_vm1, %v1110_v20, %v684_v19  ;;  %v685_v23 = vsel %vm478_vm1, %v1109_v21, %v1110_v20  ;;  %vm1778_vm1 = vcmask 924672  }
 0x1e7   : > { %v689_v26 = vsel %vm1489_vm0, %v685_v23, 0.0  ;;  %v690_v27 = vsel %vm1493_vm2, %v686_v22, 0.0  ;;  %vm1780_vm4 = vmmov %vm1778_vm1 }
 0x1e8   : > { %v719_v28 = vpack.c.bf16 %v689_v26, %v689_v26  ;;  %v720_v29 = vpack.c.bf16 %v690_v27, %v690_v27 }
 0x1ea   : > { %v730_v30 = vsel %vm526_vm3, %v719_v28, 0  ;;  %v733_v31 = vsel %vm526_vm3, %v720_v29, 0  ;;  %vm1779_vm3 = vcmask 916480  }
 0x1eb   : > { %738 = vmatpush.bf16.msra.mxu2 %v730_v30  ;;  %751 = vmatpush.bf16.msra.mxu3 %v733_v31  ;;  %v1123_v34 = vpop.permute.xlu2 %1122  ;;  %vm1781_vm5 = vmmov %vm1779_vm3 }
 0x1ec   : > { %v1125_v35 = vunpack.i.h.bf16 %v1123_v34  ;;  %v1124_v37 = vunpack.i.l.bf16 %v1123_v34 }
 0x1ee   : > { %v662_v53 = vsel %vm1782_vm13, %v1125_v35, %v660_v33  ;;  %v661_v55 = vsel %vm1783_vm9, %v1124_v37, %v1125_v35 }
 0x1ef   : > { %v970_v58 = vpack.c.bf16 %v662_v53, %v1613_v15  ;;  %v957_v62 = vpack.c.bf16 %v661_v55, %v1611_v14 }
 0x1f3   : > { %v635_v57 = vpop.permute.xlu2 %634 }
 0x1fa   : > { %v1118_v38 = vpop.permute.xlu0 %1117  ;;  %v1113_v39 = vpop.permute.xlu1 %1112 }
 0x1fb   : > { %v1120_v40 = vunpack.i.h.bf16 %v1118_v38  ;;  %v1119_v42 = vunpack.i.l.bf16 %v1118_v38  ;;  %v1115_v43 = vunpack.i.h.bf16 %v1113_v39  ;;  %v1114_v44 = vunpack.i.l.bf16 %v1113_v39  ;;  %v1138_v13 = vpop.permute.xlu2 %1137 }
 0x1fc   : > { %v1140_v1 = vunpack.i.h.bf16 %v1138_v13  ;;  %v1139_v17 = vunpack.i.l.bf16 %v1138_v13 }
 0x1fd   : > { %v673_v46 = vsel %vm1778_vm1, %v1114_v44, %v1115_v43  ;;  %v707_v47 = vsel %vm1779_vm3, %v1119_v42, %v1120_v40  ;;  %v674_v48 = vsel %vm1780_vm4, %v1115_v43, %v672_v0  ;;  %v708_v49 = vsel %vm1781_vm5, %v1120_v40, %v706_v32  ;;  %vm1786_vm1 = vmpackc.low %vm1503_vm6, %vm1489_vm0 }
 0x1fe   : > { %v954_v51 = vpack.c.bf16 %v707_v47, %v673_v46  ;;  %v967_v52 = vpack.c.bf16 %v708_v49, %v674_v48  ;;  %vm1787_vm3 = vmmov %vm1784_vm12  ;;  %vm1790_vm0 = vcmask 138240  }
 0x1ff   : > { %vm1788_vm4 = vmmov %vm1785_vm8 }
 0x200   : > { %955 = vmatpush.bf16.msk.msra.mxu2 %vm1524_vm10, %v954_v51  ;;  %968 = vmatpush.bf16.msk.msra.mxu3 %vm1532_vm11, %v967_v52  ;;  %vm1791_vm6 = vmmov %vm1790_vm0 }
 0x201   : > { %v624_v21 = vsel %vm1791_vm6, %v1139_v17, %v1140_v1 }
 0x202   : > { %v1133_v59 = vpop.permute.xlu0 %1132  ;;  %v1128_v61 = vpop.permute.xlu1 %1127 }
 0x203   : > { %v1135_v2 = vunpack.i.h.bf16 %v1133_v59  ;;  %v1134_v3 = vunpack.i.l.bf16 %v1133_v59  ;;  %v1130_v4 = vunpack.i.h.bf16 %v1128_v61  ;;  %v1129_v5 = vunpack.i.l.bf16 %v1128_v61  ;;  %v696_v19 = vpop.permute.xlu2 %695 }
 0x204   : > { %958 = vmatpush.bf16.msk.msra.mxu2 %vm1545_vm14, %v957_v62  ;;  %971 = vmatpush.bf16.msk.msra.mxu3 %vm1552_vm15, %v970_v58  ;;  %vm1789_vm14 = vmpackc.low %vm1509_vm7, %vm1493_vm2  ;;  %vm1792_vm15 = vcmask 130048   ;;  %vm1794_vm2 = vcmask 588800  }
 0x205   : > { %v636_v9 = vsel %vm1784_vm12, %v1129_v5, %v1130_v4  ;;  %v648_v10 = vsel %vm1785_vm8, %v1134_v3, %v1135_v2  ;;  %v637_v15 = vsel %vm1787_vm3, %v1130_v4, %v635_v57  ;;  %vm1793_vm5 = vmmov %vm1792_vm15 }
 0x206   : > { %v960_v12 = vpack.c.bf16 %v648_v10, %v636_v9  ;;  %vm1795_vm7 = vmmov %vm1794_vm2 }
 0x208   : > { %961 = vmatpush.bf16.msk.msra.mxu2 %vm1786_vm1, %v960_v12 }
 0x20a   : > { %v647_v14 = vpop.permute.xlu1 %646  ;;  %v623_v36 = vpop.permute.xlu0 %622 }
 0x20b   : > { %v649_v63 = vsel %vm1788_vm4, %v1135_v2, %v647_v14  ;;  %v625_v20 = vsel %vm1790_vm0, %v1140_v1, %v623_v36 }
 0x20c   : > { %v973_v16 = vpack.c.bf16 %v649_v63, %v637_v15 }
 0x20e   : > { %974 = vmatpush.bf16.msk.msra.mxu3 %vm1789_vm14, %v973_v16 }
 0x212   : > { %v1143_v0 = vpop.permute.xlu1 %1142  ;;  %v724_v27 = vpop.permute.xlu0 %723 }
 0x213   : > { %v1145_v24 = vunpack.i.h.bf16 %v1143_v0  ;;  %v1144_v18 = vunpack.i.l.bf16 %v1143_v0 }
 0x215   : > { %v697_v22 = vsel %vm1792_vm15, %v1144_v18, %v1145_v24  ;;  %v698_v23 = vsel %vm1793_vm5, %v1145_v24, %v696_v19 }
 0x216   : > { %v963_v41 = vpack.c.bf16 %v697_v22, %v624_v21  ;;  %v976_v26 = vpack.c.bf16 %v698_v23, %v625_v20 }
 0x218   : > { %964 = vmatpush.bf16.msk.msra.mxu2 %vm1524_vm10, %v963_v41  ;;  %977 = vmatpush.bf16.msk.msra.mxu3 %vm1532_vm11, %v976_v26 }
 0x21b   : > { %965 = vmatmul.msk.bf16.vlgmr.msra.gmra.mxu2 %vm1794_vm2, %v348_v25  ;;  %978 = vmatmul.msk.bf16.vlgmr.msra.gmra.mxu3 %vm1795_vm7, %v348_v25 }
 0x29e   : > { %v744_v28 = vpop.f32.mrf.mxu2  ;;  %v757_v29 = vpop.f32.mrf.mxu3 }
 0x29f   : > { %v745_v30 = vadd.f32 %v744_v28, %v724_v27  ;;  %v758_v31 = vadd.f32 %v757_v29, %v724_v27 }
 0x2a1   : > { %1155 = vtanh.f32 %v745_v30 }
 0x2a2   : > { %1157 = vtanh.f32 %v758_v31 }
 0x2a6   : > { %v746_v50 = vpop.f32.mrf.mxu2  ;;  %v759_v32 = vpop.f32.mrf.mxu3 }
 0x2a7   : > { %v1156_v56 = vpop.eup %1155 }
 0x2a8   : > { %v1158_v33 = vpop.eup %1157  ;;  %v763_v34 = vsub.f32 %v1156_v56, %v597_v54 }
 0x2a9   : > { %v764_v35 = vsub.f32 %v1158_v33, %v598_v6 }
 0x2aa   : > { %v767_v37 = vrot.slane %v763_v34, 4 }
 0x2ab   : > { %v768_v38 = vrot.slane %v764_v35, 4 }
 0x2ac   : > { %v771_v39 = vmul.f32 %v767_v37, %v1600_v60 }
 0x2ad   : > { %v772_v40 = vmul.f32 %v768_v38, %v1606_v11 }
 0x2ae   : > { %v773_v42 = vadd.f32 %v771_v39, %v1457_v7 }
 0x2af   : > { %v774_v43 = vadd.f32 %v772_v40, %v1459_v8 }
 0x2b0   : > { %775 = vst [vmem:[#allocation2] sm:$0xf0] %v773_v42 }
 0x2b1   : > { %779 = vst.sshfl [vmem:[#allocation1] sm:$0xff pattern:$0x75316420] %v773_v42 }
 0x2b2   : > { %776 = vst [vmem:[#allocation2 + $0x18] sm:$0xf0] %v774_v43 }
 0x2b3   : > { %780 = vst.sshfl [vmem:[#allocation1 + $0x8] sm:$0xff pattern:$0x75316420] %v774_v43 }
 0x2ba   : > { %v782_v54 = vld [vmem:[#allocation1 + $0x1] ss:$2 sm:$0xff] }
 0x2bb   : > { %784 = vst [vmem:[%s327_s27] sm:$0xff] %v782_v54 }
 0x2bc   : > { %1246 = shalt.err (!%p1243_p13)
}
 0x2bd   : > { %991 = dma.vmem_to_hbm [thread:$0]  (%p1404_p9), %s802_s28, 128, %s804_s30, %s786_s8  }
 0x2be PF: > { %s815_s7 = sand.u32 1, %s1285_s21   ;;  %p1001_p0 = pnand %p914_p12, %p1411_p11 }
 0x2bf   : > { %s816_s29 = scalar_lea.sflag [#allocation5], %s815_s7 }
 0x2c0   : > { %p1002_p1 = pneg %p1001_p0 }
 0x2c2   : > { %1280 = dma.done.wait (%p1002_p1), %s816_s29, 128  }
 0x2c3   : > { %1282 = vsyncadd (%p1002_p1), %s816_s29, 4294967168  ;;  %s25_s26 = sadd.s32 1, %s1305_s26   ;;  %s1796_s11 = sld [smem:[#allocation14_spill]] }
 0x2c4   : > { %p22_p2 = scmp.ge.s32.totalorder %s25_s26, 4   ;;  %s1797_s24 = sld [smem:[#allocation12_spill]] }
 0x2c5   : > { %s1798_s25 = sld [smem:[#allocation13_spill]]  ;;  %s1799_s21 = smov %s1289_s22 }
 0x2c6   : > { %s1800_s22 = smov %s1293_s23  ;;  %24 = sbr.rel (!%p22_p2) target bundleno = 8 (0x8), region = 108 }
 0x2c9   : > { %s1801_s23 = smov %s1796_s11 }
 0x2cb   :  { %822 = vsyncpa [#allocation4], 1 }
 0x2cc   :  { %824 = vsyncpa [#allocation4 + $0x1], 1 }
 0x2cd   :  { %825 = vsyncpa [#allocation7], 1 }
 0x2ce   :  { %827 = vsyncpa [#allocation7 + $0x1], 1 }
 0x2cf   :  { %828 = vsyncpa [#allocation5], 1 }
 0x2d0   :  { %830 = vsyncpa [#allocation5 + $0x1], 1 }

</bundles_post_ra>
